<compile_context>
chip_gen: v6e
topology: v6e:2x2x1
jax: 0.10.0
libtpu: 0.0.40
codegen_flags: <defaults>
</compile_context>

<pallas_src>
import functools

import jax
import jax.numpy as jnp
from jax import lax
from jax.experimental import pallas as pl
from jax.experimental.pallas import tpu as pltpu

SUB = 128              # rows per inner sub-chunk (bounds live h1/h2 vreg footprint)
MAX_SUB_PER_TILE = 4   # DMA tile up to 512 rows per grid step
LANES = 128            # lane width for padding the class dim


def _round_up(n, m):
    return ((n + m - 1) // m) * m


def _elementwise_dtype():
    """bf16 elementwise math on v6e/v7x (bf16 VPU/EUP); f32 on v5e and earlier."""
    try:
        kind = jax.devices()[0].device_kind.lower()
    except Exception:
        return jnp.float32
    if any(tag in kind for tag in ("v2", "v3", "v4", "v5")):
        return jnp.float32
    return jnp.bfloat16


def _mlp_kernel(x_ref, w1_ref, b1_ref, w2_ref, b2_ref, w3_ref, b3_ref, o_ref,
                *, n_sub, sub, ew_dtype):
    # Resident weights/biases: loaded from VMEM once per grid step, reused by
    # every sub-chunk of the batch tile.
    w1 = w1_ref[...]
    b1 = b1_ref[...]
    w2 = w2_ref[...]
    b2 = b2_ref[...]
    w3 = w3_ref[...]
    b3 = b3_ref[...]

    def sigmoid(z):
        # Single EUP transcendental (tanh) per element instead of exp + divide.
        return 0.5 * (1.0 + jnp.tanh(0.5 * z))

    def process(row0):
        x = x_ref[pl.ds(row0, sub), :].astype(jnp.bfloat16)
        # fc1 + sigmoid (f32 MXU accumulation, elementwise in ew_dtype)
        z1 = jnp.dot(x, w1, preferred_element_type=jnp.float32) + b1
        h1 = sigmoid(z1.astype(ew_dtype)).astype(jnp.bfloat16)
        # fc2 + sigmoid
        z2 = jnp.dot(h1, w2, preferred_element_type=jnp.float32) + b2
        h2 = sigmoid(z2.astype(ew_dtype)).astype(jnp.bfloat16)
        # fc3 logits (no activation — CrossEntropyLoss applies softmax in PyTorch)
        z3 = jnp.dot(h2, w3, preferred_element_type=jnp.float32) + b3
        o_ref[pl.ds(row0, sub), :] = z3.astype(o_ref.dtype)

    if n_sub == 1:
        process(0)
    else:
        def body(i, carry):
            process(pl.multiple_of(i * sub, sub))
            return carry
        lax.fori_loop(0, n_sub, body, 0, unroll=True)


def prepare_params(params):
    """One-time conversion hoisted out of the per-call path: bf16 MXU-operand
    weights, f32 biases, class dim padded to a multiple of 128 lanes."""
    w1, b1, w2, b2, w3, b3 = params
    c = w3.shape[1]
    c_pad = _round_up(c, LANES)
    if c_pad != c:
        w3 = jnp.pad(w3, ((0, 0), (0, c_pad - c)))
        b3 = jnp.pad(b3, ((0, 0), (0, c_pad - c)))
    return (w1.astype(jnp.bfloat16), b1.astype(jnp.float32),
            w2.astype(jnp.bfloat16), b2.astype(jnp.float32),
            w3.astype(jnp.bfloat16), b3.astype(jnp.float32))


def linear_classification_forward(x, prepared_params, n_classes):
    """Fused MLP forward. x: (B, D) float32. Returns (B, n_classes) f32 logits."""
    w1, b1, w2, b2, w3, b3 = prepared_params
    B, D = x.shape
    H1 = w1.shape[1]
    H2 = w2.shape[1]
    C_pad = w3.shape[1]

    # --- batch tiling --------------------------------------------------------
    if B <= SUB:
        tb = _round_up(max(B, 1), 8)          # single small tile, minimal padding
        sub, n_sub, n_tiles = tb, 1, 1
    else:
        n_sub_total = pl.cdiv(B, SUB)
        # >=2 grid tiles when possible (both v7x TensorCores busy); up to
        # MAX_SUB_PER_TILE 128-row sub-chunks per tile to amortize the
        # ~0.35 us per-grid-step pipeline overhead.
        n_sub = min(MAX_SUB_PER_TILE, max(1, n_sub_total // 2))
        n_tiles = pl.cdiv(n_sub_total, n_sub)
        sub = SUB
        tb = n_sub * SUB
    B_pad = n_tiles * tb

    if B_pad != B:
        x = jnp.pad(x, ((0, B_pad - B), (0, 0)))

    ew_dtype = _elementwise_dtype()
    kernel = functools.partial(_mlp_kernel, n_sub=n_sub, sub=sub, ew_dtype=ew_dtype)

    resident = lambda shape: pl.BlockSpec(shape, lambda i: (0, 0))

    cost = pl.CostEstimate(
        flops=2 * B_pad * (D * H1 + H1 * H2 + H2 * C_pad),
        transcendentals=B_pad * (H1 + H2),
        bytes_accessed=(B_pad * D * 4 + B_pad * C_pad * 4
                        + 2 * (D * H1 + H1 * H2 + H2 * C_pad)   # bf16 weights
                        + 4 * (H1 + H2 + C_pad)),               # f32 biases
    )

    out = pl.pallas_call(
        kernel,
        out_shape=jax.ShapeDtypeStruct((B_pad, C_pad), jnp.float32),
        grid=(n_tiles,),
        in_specs=[
            pl.BlockSpec((tb, D), lambda i: (i, 0)),      # x: streamed over batch
            resident((D, H1)), resident((1, H1)),         # fc1 (resident)
            resident((H1, H2)), resident((1, H2)),        # fc2 (resident)
            resident((H2, C_pad)), resident((1, C_pad)),  # fc3 (resident, lane-padded)
        ],
        out_specs=pl.BlockSpec((tb, C_pad), lambda i: (i, 0)),
        compiler_params=pltpu.CompilerParams(
            dimension_semantics=("parallel",)),
        cost_estimate=cost,
    )(x, w1, b1, w2, b2, w3, b3)

    # TODO(synk): downstream consumers that can read the padded (B_pad, C_pad)
    # logits buffer directly should skip this slice (saves one HBM pass).
    return out[:B, :n_classes]


def init_params(key, input_dim, n_classes):
    """Deterministic init mimicking PyTorch nn.Linear default (U(+/- 1/sqrt(fan_in)))."""
    def linear_init(k, fan_in, fan_out):
        kw, kb = jax.random.split(k)
        bound = 1.0 / jnp.sqrt(fan_in)
        w = jax.random.uniform(kw, (fan_in, fan_out), jnp.float32, -bound, bound)
        b = jax.random.uniform(kb, (1, fan_out), jnp.float32, -bound, bound)
        return w, b

    k1, k2, k3 = jax.random.split(key, 3)
    w1, b1 = linear_init(k1, input_dim, 128)
    w2, b2 = linear_init(k2, 128, 256)
    w3, b3 = linear_init(k3, 256, n_classes)
    return (w1, b1, w2, b2, w3, b3)


def reference_forward(x, params):
    w1, b1, w2, b2, w3, b3 = params
    h1 = jax.nn.sigmoid(x @ w1 + b1)
    h2 = jax.nn.sigmoid(h1 @ w2 + b2)
    return h2 @ w3 + b3


# TODO(synk): the .learn() path (Adam step + CrossEntropyLoss backward) is a
# training loop, not a forward op, and is intentionally not translated here.

if __name__ == "__main__":
    key = jax.random.PRNGKey(0)
    k_params, k_data = jax.random.split(key)

    batch = 8
    input_dim = 32     # input_dims of the PyTorch module
    n_classes = 10

    params = init_params(k_params, input_dim, n_classes)
    prepared = prepare_params(params)   # one-time: bf16 cast + lane padding

    x = jax.random.normal(k_data, (batch, input_dim), dtype=jnp.float32)

    fwd = jax.jit(linear_classification_forward, static_argnames=("n_classes",))
    out = fwd(x, prepared, n_classes=n_classes)
    out = jax.block_until_ready(out)

    ref = reference_forward(x, params)
    assert out.shape == (batch, n_classes)
    # bf16 MXU operands (+ bf16 elementwise on v6e/v7x) with f32 accumulation
    # -> loosened tolerance vs the pure-f32 reference.
    err = float(jnp.max(jnp.abs(out - ref)))
    assert jnp.allclose(out, ref, atol=3e-2, rtol=3e-2), err

    print("KERNEL_OK")
</pallas_src>

<mosaic_0001>
module attributes {stable_mosaic.version = 11 : i64} {
  func.func @_mlp_kernel(%arg0: i32, %arg1: memref<8x32xf32, #tpu.memory_space<vmem>>, %arg2: memref<32x128xbf16, #tpu.memory_space<vmem>>, %arg3: memref<1x128xf32, #tpu.memory_space<vmem>>, %arg4: memref<128x256xbf16, #tpu.memory_space<vmem>>, %arg5: memref<1x256xf32, #tpu.memory_space<vmem>>, %arg6: memref<256x128xbf16, #tpu.memory_space<vmem>>, %arg7: memref<1x128xf32, #tpu.memory_space<vmem>>, %arg8: memref<8x128xf32, #tpu.memory_space<vmem>>) attributes {dimension_semantics = [#tpu.dimension_semantics<parallel>], iteration_bounds = array<i64: 1>, scalar_prefetch = 0 : i64, scratch_operands = 0 : i64, tpu.core_type = #tpu.core_type<tc>, window_params = [{transform_indices = @transform_0, window_bounds = array<i64: 8, 32>}, {pipeline_mode = #tpu.pipeline_mode<synchronous>, transform_indices = @transform_1, window_bounds = array<i64: 32, 128>}, {pipeline_mode = #tpu.pipeline_mode<synchronous>, transform_indices = @transform_2, window_bounds = array<i64: 1, 128>}, {pipeline_mode = #tpu.pipeline_mode<synchronous>, transform_indices = @transform_3, window_bounds = array<i64: 128, 256>}, {pipeline_mode = #tpu.pipeline_mode<synchronous>, transform_indices = @transform_4, window_bounds = array<i64: 1, 256>}, {pipeline_mode = #tpu.pipeline_mode<synchronous>, transform_indices = @transform_5, window_bounds = array<i64: 256, 128>}, {pipeline_mode = #tpu.pipeline_mode<synchronous>, transform_indices = @transform_6, window_bounds = array<i64: 1, 128>}, {transform_indices = @transform_7, window_bounds = array<i64: 8, 128>}]} {
    %c0 = arith.constant 0 : index
    %c0_0 = arith.constant 0 : index
    %0 = vector.load %arg2[%c0, %c0_0] : memref<32x128xbf16, #tpu.memory_space<vmem>>, vector<32x128xbf16>
    %c0_1 = arith.constant 0 : index
    %c0_2 = arith.constant 0 : index
    %1 = vector.load %arg3[%c0_1, %c0_2] : memref<1x128xf32, #tpu.memory_space<vmem>>, vector<1x128xf32>
    %c0_3 = arith.constant 0 : index
    %c0_4 = arith.constant 0 : index
    %2 = vector.load %arg4[%c0_3, %c0_4] : memref<128x256xbf16, #tpu.memory_space<vmem>>, vector<128x256xbf16>
    %c0_5 = arith.constant 0 : index
    %c0_6 = arith.constant 0 : index
    %3 = vector.load %arg5[%c0_5, %c0_6] : memref<1x256xf32, #tpu.memory_space<vmem>>, vector<1x256xf32>
    %c0_7 = arith.constant 0 : index
    %c0_8 = arith.constant 0 : index
    %4 = vector.load %arg6[%c0_7, %c0_8] : memref<256x128xbf16, #tpu.memory_space<vmem>>, vector<256x128xbf16>
    %c0_9 = arith.constant 0 : index
    %c0_10 = arith.constant 0 : index
    %5 = vector.load %arg7[%c0_9, %c0_10] : memref<1x128xf32, #tpu.memory_space<vmem>>, vector<1x128xf32>
    %c0_11 = arith.constant 0 : index
    %c0_12 = arith.constant 0 : index
    %6 = vector.load %arg1[%c0_11, %c0_12] : memref<8x32xf32, #tpu.memory_space<vmem>>, vector<8x32xf32>
    %7 = arith.truncf %6 : vector<8x32xf32> to vector<8x32xbf16>
    %cst = arith.constant dense<0.000000e+00> : vector<8x128xf32>
    %8 = tpu.matmul %7, %0, %cst {dimension_numbers = #tpu.dot_dimension_numbers<[1], [0], [0], [1], [0, 0, 1, 1], [], []>} : vector<8x32xbf16>, vector<32x128xbf16>, vector<8x128xf32> -> vector<8x128xf32>
    %9 = vector.broadcast %1 : vector<1x128xf32> to vector<8x128xf32>
    %10 = arith.addf %8, %9 : vector<8x128xf32>
    %11 = arith.truncf %10 : vector<8x128xf32> to vector<8x128xbf16>
    %cst_13 = arith.constant 5.000000e-01 : bf16
    %12 = vector.broadcast %cst_13 : bf16 to vector<8x128xbf16>
    %13 = arith.mulf %12, %11 : vector<8x128xbf16>
    %14 = math.tanh %13 : vector<8x128xbf16>
    %cst_14 = arith.constant 1.000000e+00 : bf16
    %15 = vector.broadcast %cst_14 : bf16 to vector<8x128xbf16>
    %16 = arith.addf %15, %14 : vector<8x128xbf16>
    %cst_15 = arith.constant 5.000000e-01 : bf16
    %17 = vector.broadcast %cst_15 : bf16 to vector<8x128xbf16>
    %18 = arith.mulf %17, %16 : vector<8x128xbf16>
    %cst_16 = arith.constant dense<0.000000e+00> : vector<8x256xf32>
    %19 = tpu.matmul %18, %2, %cst_16 {dimension_numbers = #tpu.dot_dimension_numbers<[1], [0], [0], [1], [0, 0, 1, 1], [], []>} : vector<8x128xbf16>, vector<128x256xbf16>, vector<8x256xf32> -> vector<8x256xf32>
    %20 = vector.broadcast %3 : vector<1x256xf32> to vector<8x256xf32>
    %21 = arith.addf %19, %20 : vector<8x256xf32>
    %22 = arith.truncf %21 : vector<8x256xf32> to vector<8x256xbf16>
    %cst_17 = arith.constant 5.000000e-01 : bf16
    %23 = vector.broadcast %cst_17 : bf16 to vector<8x256xbf16>
    %24 = arith.mulf %23, %22 : vector<8x256xbf16>
    %25 = math.tanh %24 : vector<8x256xbf16>
    %cst_18 = arith.constant 1.000000e+00 : bf16
    %26 = vector.broadcast %cst_18 : bf16 to vector<8x256xbf16>
    %27 = arith.addf %26, %25 : vector<8x256xbf16>
    %cst_19 = arith.constant 5.000000e-01 : bf16
    %28 = vector.broadcast %cst_19 : bf16 to vector<8x256xbf16>
    %29 = arith.mulf %28, %27 : vector<8x256xbf16>
    %cst_20 = arith.constant dense<0.000000e+00> : vector<8x128xf32>
    %30 = tpu.matmul %29, %4, %cst_20 {dimension_numbers = #tpu.dot_dimension_numbers<[1], [0], [0], [1], [0, 0, 1, 1], [], []>} : vector<8x256xbf16>, vector<256x128xbf16>, vector<8x128xf32> -> vector<8x128xf32>
    %31 = vector.broadcast %5 : vector<1x128xf32> to vector<8x128xf32>
    %32 = arith.addf %30, %31 : vector<8x128xf32>
    %c0_21 = arith.constant 0 : index
    %c0_22 = arith.constant 0 : index
    %33 = vector.load %arg8[%c0_21, %c0_22] : memref<8x128xf32, #tpu.memory_space<vmem>>, vector<8x128xf32>
    tpu.vector_store %arg8[%c0_21, %c0_22], %32 {strides = array<i32>} : memref<8x128xf32, #tpu.memory_space<vmem>>, vector<8x128xf32>,
    return
  }
  func.func @transform_0(%arg0: i32) -> (i32, i32) {
    %c0_i32 = arith.constant 0 : i32
    %c0_i32_0 = arith.constant 0 : i32
    return %arg0, %c0_i32 : i32, i32
  }
  func.func @transform_1(%arg0: i32) -> (i32, i32) {
    %c0_i32 = arith.constant 0 : i32
    %c0_i32_0 = arith.constant 0 : i32
    %c0_i32_1 = arith.constant 0 : i32
    return %c0_i32, %c0_i32_0 : i32, i32
  }
  func.func @transform_2(%arg0: i32) -> (i32, i32) {
    %c0_i32 = arith.constant 0 : i32
    %c0_i32_0 = arith.constant 0 : i32
    %c0_i32_1 = arith.constant 0 : i32
    return %c0_i32, %c0_i32_0 : i32, i32
  }
  func.func @transform_3(%arg0: i32) -> (i32, i32) {
    %c0_i32 = arith.constant 0 : i32
    %c0_i32_0 = arith.constant 0 : i32
    %c0_i32_1 = arith.constant 0 : i32
    return %c0_i32, %c0_i32_0 : i32, i32
  }
  func.func @transform_4(%arg0: i32) -> (i32, i32) {
    %c0_i32 = arith.constant 0 : i32
    %c0_i32_0 = arith.constant 0 : i32
    %c0_i32_1 = arith.constant 0 : i32
    return %c0_i32, %c0_i32_0 : i32, i32
  }
  func.func @transform_5(%arg0: i32) -> (i32, i32) {
    %c0_i32 = arith.constant 0 : i32
    %c0_i32_0 = arith.constant 0 : i32
    %c0_i32_1 = arith.constant 0 : i32
    return %c0_i32, %c0_i32_0 : i32, i32
  }
  func.func @transform_6(%arg0: i32) -> (i32, i32) {
    %c0_i32 = arith.constant 0 : i32
    %c0_i32_0 = arith.constant 0 : i32
    %c0_i32_1 = arith.constant 0 : i32
    return %c0_i32, %c0_i32_0 : i32, i32
  }
  func.func @transform_7(%arg0: i32) -> (i32, i32) {
    %c0_i32 = arith.constant 0 : i32
    %c0_i32_0 = arith.constant 0 : i32
    return %arg0, %c0_i32 : i32, i32
  }
}

</mosaic_0001>

<bundles_post_ra>
// kernel: linear_classification_forward.1
= control target key start
LH: loop header
LB: loop body
LE: loop exit
PB: predicated region body
PF: predicated region fallthrough
CT: control target
= control target key end

     0   :  { %12 = vsyncpa [#allocation3], 0  ;;  %s829_s0 = inlined_call_operand.hbm [shape: f32[8,32], index: 0, kind: input, shape index: {}]   ;;  %s830_s1 = inlined_call_operand.hbm [shape: bf16[32,128], index: 1, kind: input, shape index: {}]   ;;  %s831_s2 = inlined_call_operand.vmem [shape: f32[1,128], index: 2, kind: input, shape index: {}]   ;;  %s832_s3 = inlined_call_operand.hbm [shape: bf16[128,256], index: 3, kind: input, shape index: {}]   ;;  %s833_s4 = inlined_call_operand.vmem [shape: f32[1,256], index: 4, kind: input, shape index: {}]   ;;  %s834_s5 = inlined_call_operand.hbm [shape: bf16[256,128], index: 5, kind: input, shape index: {}]   ;;  %s835_s6 = inlined_call_operand.vmem [shape: f32[1,128], index: 6, kind: input, shape index: {}]   ;;  %s836_s7 = inlined_call_operand.hbm [shape: f32[8,128], index: 7, kind: output, shape index: {}]  }
   0x1   :  { %13 = vsyncpa [#allocation6], 0 }
   0x2   :  { %14 = vsyncpa [#allocation9], 0 }
   0x3   :  { %15 = vsyncpa [#allocation4], 0  ;;  %s747_s24 = smov [#allocation5]  }
   0x4   :  { %s31_s25 = sshll.u32 %s747_s24, 4  ;;  %s32_s25 = int_to_ptr.vmem [resolvable:$true] %s31_s25 }
   0x5   :  { %s647_s26 = scalar_lea.vmem %s32_s25, 256  ;;  %p652_p1 = scmp.lt.s32.totalorder %s32_s25, %s32_s25 }
   0x6   :  { %p648_p0 = scmp.ne.s32.totalorder %s32_s25, %s647_s26  ;;  %p653_p2 = scmp.lt.s32.totalorder %s647_s26, %s647_s26 }
   0x8   :  { %p654_p3 = por %p653_p2, %p652_p1 }
   0xa   :  { %p655_p4 = pnand %p654_p3, %p648_p0 }
   0xc   :  { %658 = shalt.err (!%p655_p4)
}
   0xd   :  { %s748_s27 = smov 64   ;;  %s749_s28 = smov 4  }
   0xe   :  { %37 = dma.hbm_to_vmem [thread:$0]  %s830_s1, 256, %s32_s25, [#allocation6], %s748_s27, %s748_s27, %s749_s28  }
   0xf   :  { %s750_s8 = smov [#allocation2]   ;;  %s751_s10 = smov [#allocation7]  }
  0x10   :  { %s22_s9 = sshll.u32 %s750_s8, 4  ;;  %s45_s11 = sshll.u32 %s751_s10, 4  ;;  %s23_s9 = int_to_ptr.vmem [resolvable:$true] %s22_s9  ;;  %s46_s11 = int_to_ptr.vmem [resolvable:$true] %s45_s11 }
  0x11   :  { %s667_s12 = scalar_lea.vmem %s23_s9, 128  ;;  %p672_p6 = scmp.lt.s32.totalorder %s23_s9, %s23_s9 }
  0x12   :  { %p668_p5 = scmp.ne.s32.totalorder %s23_s9, %s667_s12  ;;  %p673_p7 = scmp.lt.s32.totalorder %s667_s12, %s667_s12 }
  0x14   :  { %p674_p8 = por %p673_p7, %p672_p6 }
  0x16   :  { %p675_p9 = pnand %p674_p8, %p668_p5 }
  0x18   :  { %678 = shalt.err (!%p675_p9)
}
  0x19   :  { %25 = dma.hbm_to_vmem [thread:$0]  %s829_s0, 128, %s23_s9, [#allocation3]  }
  0x1a   :  { %s687_s15 = scalar_lea.vmem %s46_s11, 2048  ;;  %p692_p11 = scmp.lt.s32.totalorder %s46_s11, %s46_s11 }
  0x1b   :  { %p688_p10 = scmp.ne.s32.totalorder %s46_s11, %s687_s15  ;;  %p693_p12 = scmp.lt.s32.totalorder %s687_s15, %s687_s15 }
  0x1d   :  { %p694_p13 = por %p693_p12, %p692_p11 }
  0x1f   :  { %p695_p0 = pnand %p694_p13, %p688_p10 }
  0x21   :  { %698 = shalt.err (!%p695_p0)
}
  0x22   :  { %s752_s1 = smov 128   ;;  %s753_s16 = smov 8  }
  0x23   :  { %51 = dma.hbm_to_vmem [thread:$0]  %s832_s3, 2048, %s46_s11, [#allocation6], %s752_s1, %s752_s1, %s753_s16  }
  0x24   :  { %s754_s19 = smov [#allocation8]  }
  0x25   :  { %s59_s20 = sshll.u32 %s754_s19, 4  ;;  %s60_s20 = int_to_ptr.vmem [resolvable:$true] %s59_s20 }
  0x26   :  { %s707_s21 = scalar_lea.vmem %s60_s20, 2048  ;;  %p712_p2 = scmp.lt.s32.totalorder %s60_s20, %s60_s20 }
  0x27   :  { %p708_p1 = scmp.ne.s32.totalorder %s60_s20, %s707_s21  ;;  %p713_p3 = scmp.lt.s32.totalorder %s707_s21, %s707_s21 }
  0x29   :  { %p714_p4 = por %p713_p3, %p712_p2 }
  0x2b   :  { %p715_p5 = pnand %p714_p4, %p708_p1 }
  0x2d   :  { %718 = shalt.err (!%p715_p5)
}
  0x2e   :  { %65 = dma.hbm_to_vmem [thread:$0]  %s834_s5, 2048, %s60_s20, [#allocation9], %s748_s27, %s748_s27, %s749_s28  }
  0x2f   :  { %739 = dma.done.wait [#allocation3], 128  }
  0x30   :  { %740 = vsyncadd [#allocation3], 4294967168 }
  0x31   :  { %741 = dma.done.wait [#allocation6], 2304  }
  0x32   :  { %742 = vsyncadd [#allocation6], 4294964992 }
  0x33   :  { %743 = dma.done.wait [#allocation9], 2048  }
  0x34   :  { %744 = vsyncadd [#allocation9], 4294965248  ;;  %v755_v0 = vmov 0.0   ;;  %vm756_vm0 = vmmov 0   ;;  %v591_v1 = vld [vmem:[#allocation5 + $0x8] sm:$0xff]   ;;  %v592_v2 = vld [vmem:[#allocation5] sm:$0xff]   ;;  %v208_v49 = vlaneseq }
  0x35   :  { %571 = vmatprep.subr.bf16.mxu0 %v755_v0  ;;  %575 = vmatprep.mubr.msk.bf16.mxu0 %vm756_vm0, %v755_v0  ;;  %v138_v3 = vld [vmem:[#allocation2] sm:$0xff]  ;;  %v593_v4 = vld [vmem:[#allocation7 + $0x74] ss:$8 sps:$4 sm:$0xff]   ;;  %v595_v5 = vld [vmem:[#allocation7 + $0x70] ss:$8 sps:$4 sm:$0xff]   ;;  %vm158_vm1 = vcmask 261120  }
  0x36   :  { %572 = vmatpush3.bf16.msra.mxu0 %v591_v1  ;;  %v596_v6 = vld [vmem:[#allocation7 + $0x64] ss:$8 sps:$4 sm:$0xff]   ;;  %v139_v7 = vpack.c.bf16 %v138_v3, %v138_v3  ;;  %298 = vmatprep.subr.bf16.mxu1 %v593_v4  ;;  %v598_v8 = vld [vmem:[#allocation7 + $0x60] ss:$8 sps:$4 sm:$0xff]   ;;  %v599_v9 = vld [vmem:[#allocation7 + $0x54] ss:$8 sps:$4 sm:$0xff]  }
  0x37   :  { %573 = vmatprep.subr.bf16.mxu0 %v755_v0  ;;  %299 = vmatpush1.bf16.msra.mxu1 %v595_v5  ;;  %v601_v10 = vld [vmem:[#allocation7 + $0x50] ss:$8 sps:$4 sm:$0xff]   ;;  %v602_v11 = vld [vmem:[#allocation7 + $0x44] ss:$8 sps:$4 sm:$0xff]   ;;  %v604_v12 = vld [vmem:[#allocation7 + $0x40] ss:$8 sps:$4 sm:$0xff]  }
  0x38   :  { %300 = vmatprep.subr.bf16.mxu1 %v596_v6  ;;  %v605_v13 = vld [vmem:[#allocation7 + $0x34] ss:$8 sps:$4 sm:$0xff]   ;;  %v607_v14 = vld [vmem:[#allocation7 + $0x30] ss:$8 sps:$4 sm:$0xff]   ;;  %v608_v15 = vld [vmem:[#allocation7 + $0x24] ss:$8 sps:$4 sm:$0xff]  }
  0x39   :  { %v757_v16 = vmov 0   ;;  %v610_v17 = vld [vmem:[#allocation7 + $0x20] ss:$8 sps:$4 sm:$0xff]   ;;  %v611_v18 = vld [vmem:[#allocation7 + $0x14] ss:$8 sps:$4 sm:$0xff]   ;;  %v209_v50 = vshrl.u32 %v208_v49, 7 }
  0x3a   :  { %574 = vmatpush3.bf16.msra.mxu0 %v592_v2  ;;  %330 = vmatprep.mubr.bf16.mxu1 %v757_v16  ;;  %v613_v19 = vld [vmem:[#allocation7 + $0x10] ss:$8 sps:$4 sm:$0xff]   ;;  %v614_v20 = vld [vmem:[#allocation7 + $0x4] ss:$8 sps:$4 sm:$0xff]   ;;  %v616_v21 = vld [vmem:[#allocation7] ss:$8 sps:$4 sm:$0xff]  }
  0x3b   :  { %301 = vmatpush1.bf16.msra.mxu1 %v598_v8  ;;  %v617_v22 = vld [vmem:[#allocation8 + $0x78] sm:$0xff]   ;;  %v509_v24 = vld [vmem:[%s831_s2] ss:$0 sm:$0xff]  ;;  %v619_v35 = vld [vmem:[#allocation8 + $0x70] sm:$0xff]   ;;  %v210_v51 = vsub.s32 0, %v209_v50  ;;  %v214_v53 = vsub.s32 1, %v209_v50 }
  0x3c   :  { %302 = vmatprep.subr.bf16.mxu1 %v599_v9  ;;  %v618_v23 = vld [vmem:[#allocation8 + $0x38] sm:$0xff]   ;;  %549 = vmatprep.subr.bf16.mxu0 %v617_v22  ;;  %v620_v36 = vld [vmem:[#allocation8 + $0x30] sm:$0xff]   ;;  %v621_v37 = vld [vmem:[#allocation8 + $0x68] sm:$0xff]   ;;  %s758_s25 = smov [#allocation10]  }
  0x3d   :  { %576 = vmatmul.mubr.msk.bf16.vlgmr.msra.gmra.mxu0 %vm158_vm1, %v139_v7  ;;  %v622_v38 = vld [vmem:[#allocation8 + $0x28] sm:$0xff]   ;;  %v623_v39 = vld [vmem:[#allocation8 + $0x60] sm:$0xff]   ;;  %v625_v41 = vld [vmem:[#allocation8 + $0x58] sm:$0xff]   ;;  %s498_s26 = sshll.u32 %s758_s25, 4  ;;  %s499_s26 = int_to_ptr.vmem [resolvable:$true] %s498_s26 }
  0x3e   :  { %550 = vmatpush3.bf16.msra.mxu0 %v618_v23  ;;  %v624_v40 = vld [vmem:[#allocation8 + $0x20] sm:$0xff]   ;;  %v626_v42 = vld [vmem:[#allocation8 + $0x18] sm:$0xff]   ;;  %v627_v43 = vld [vmem:[#allocation8 + $0x50] sm:$0xff]   ;;  %s719_s27 = scalar_lea.vmem %s499_s26, 128  ;;  %p724_p7 = scmp.lt.s32.totalorder %s499_s26, %s499_s26 }
  0x3f   :  { %303 = vmatpush1.bf16.msra.mxu1 %v601_v10  ;;  %551 = vmatprep.subr.bf16.mxu0 %v619_v35  ;;  %v628_v44 = vld [vmem:[#allocation8 + $0x10] sm:$0xff]   ;;  %v629_v45 = vld [vmem:[#allocation8 + $0x48] sm:$0xff]   ;;  %v631_v47 = vld [vmem:[#allocation8 + $0x40] sm:$0xff]   ;;  %p720_p6 = scmp.ne.s32.totalorder %s499_s26, %s719_s27  ;;  %p725_p8 = scmp.lt.s32.totalorder %s719_s27, %s719_s27 }
  0x40   :  { %304 = vmatprep.subr.bf16.mxu1 %v602_v11  ;;  %v630_v46 = vld [vmem:[#allocation8 + $0x8] sm:$0xff]   ;;  %v632_v48 = vld [vmem:[#allocation8] sm:$0xff]  }
  0x41   :  { %v104_v52 = vld [vmem:[%s833_s4] sm:$0x3]  ;;  %p726_p9 = por %p725_p8, %p724_p7 }
  0x42   :  { %552 = vmatpush3.bf16.msra.mxu0 %v620_v36  ;;  %v211_v54 = vrot.slane %v104_v52, %v210_v51  ;;  %v215_v55 = vrot.slane %v104_v52, %v214_v53  ;;  %v529_v9 = vld [vmem:[%s835_s6] ss:$0 sm:$0xff] }
  0x43   :  { %305 = vmatpush1.bf16.msra.mxu1 %v604_v12  ;;  %553 = vmatprep.subr.bf16.mxu0 %v621_v37  ;;  %p727_p10 = pnand %p726_p9, %p720_p6 }
  0x44   :  { %306 = vmatprep.subr.bf16.mxu1 %v605_v13 }
  0x46   :  { %554 = vmatpush3.bf16.msra.mxu0 %v622_v38 }
  0x47   :  { %307 = vmatpush1.bf16.msra.mxu1 %v607_v14  ;;  %555 = vmatprep.subr.bf16.mxu0 %v623_v39 }
  0x48   :  { %308 = vmatprep.subr.bf16.mxu1 %v608_v15 }
  0x4a   :  { %556 = vmatpush3.bf16.msra.mxu0 %v624_v40 }
  0x4b   :  { %309 = vmatpush1.bf16.msra.mxu1 %v610_v17  ;;  %557 = vmatprep.subr.bf16.mxu0 %v625_v41 }
  0x4c   :  { %310 = vmatprep.subr.bf16.mxu1 %v611_v18 }
  0x4e   :  { %558 = vmatpush3.bf16.msra.mxu0 %v626_v42 }
  0x4f   :  { %311 = vmatpush1.bf16.msra.mxu1 %v613_v19  ;;  %559 = vmatprep.subr.bf16.mxu0 %v627_v43 }
  0x50   :  { %312 = vmatprep.subr.bf16.mxu1 %v614_v20 }
  0x52   :  { %560 = vmatpush3.bf16.msra.mxu0 %v628_v44 }
  0x53   :  { %313 = vmatpush1.bf16.msra.mxu1 %v616_v21  ;;  %561 = vmatprep.subr.bf16.mxu0 %v629_v45 }
  0x56   :  { %562 = vmatpush3.bf16.msra.mxu0 %v630_v46 }
  0x57   :  { %563 = vmatprep.subr.bf16.mxu0 %v631_v47 }
  0x5a   :  { %564 = vmatpush3.bf16.msra.mxu0 %v632_v48 }
  0xfd   :  { %v196_v25 = vpop.f32.mrf.mxu0 }
  0xfe   :  { %v197_v26 = vadd.f32 %v509_v24, %v196_v25 }
  0xff   :  { %v577_v27 = vpop.f32.mrf.mxu0 }
 0x100   :  { %v202_v28 = vpack.c.bf16 %v197_v26, %v197_v26 }
 0x101   :  { %v199_v29 = vpop.f32.mrf.mxu0 }
 0x102   :  { %v203_v30 = vmul.bf16 1056980736, %v202_v28 }
 0x103   :  { %v578_v31 = vpop.f32.mrf.mxu0 }
 0x104   :  { %633 = vtanh.bf16 %v203_v30 }
 0x112   :  { %v634_v32 = vpop.eup %633 }
 0x113   :  { %v205_v33 = vadd.bf16 1065369472, %v634_v32 }
 0x115   :  { %v206_v34 = vmul.bf16 1056980736, %v205_v33 }
 0x117   :  { %331 = vmatmul.mubr.bf16.vlgmr.msra.gmra.mxu1 %v206_v34 }
 0x1d7   :  { %v332_v56 = vpop.f32.mrf.mxu1 }
 0x1d8   :  { %v333_v57 = vadd.f32 %v332_v56, %v211_v54 }
 0x1d9   :  { %v334_v58 = vpop.f32.mrf.mxu1 }
 0x1da   :  { %v339_v59 = vpack.c.bf16 %v333_v57, %v333_v57  ;;  %v335_v60 = vadd.f32 %v334_v58, %v215_v55 }
 0x1db   :  { %v336_v61 = vpop.f32.mrf.mxu1 }
 0x1dc   :  { %v341_v62 = vmul.bf16 1056980736, %v339_v59  ;;  %v340_v63 = vpack.c.bf16 %v335_v60, %v335_v60 }
 0x1dd   :  { %v337_v0 = vpop.f32.mrf.mxu1 }
 0x1de   :  { %635 = vtanh.bf16 %v341_v62  ;;  %v342_v1 = vmul.bf16 1056980736, %v340_v63 }
 0x1e0   :  { %637 = vtanh.bf16 %v342_v1 }
 0x1ec   :  { %v636_v2 = vpop.eup %635 }
 0x1ed   :  { %v345_v4 = vadd.bf16 1065369472, %v636_v2 }
 0x1ee   :  { %v638_v3 = vpop.eup %637 }
 0x1ef   :  { %v346_v5 = vadd.bf16 1065369472, %v638_v3  ;;  %v347_v7 = vmul.bf16 1056980736, %v345_v4 }
 0x1f1   :  { %v348_v6 = vmul.bf16 1056980736, %v346_v5 }
 0x1f3   :  { %483 = vmatprep.mubr.bf16.mxu0 %v348_v6 }
 0x1f4   :  { %484 = vmatmul.mubr.bf16.vlgmr.msra.gmra.mxu0 %v347_v7 }
 0x2b4   :  { %v565_v8 = vpop.f32.mrf.mxu0 }
 0x2b6   :  { %v566_v10 = vpop.f32.mrf.mxu0 }
 0x2b7   :  { %v567_v11 = vadd.f32 %v566_v10, %v565_v8 }
 0x2b8   :  { %v568_v12 = vpop.f32.mrf.mxu0 }
 0x2b9   :  { %v486_v13 = vadd.f32 %v567_v11, %v529_v9 }
 0x2ba   :  { %v569_v14 = vpop.f32.mrf.mxu0 }
 0x2bb   :  { %491 = vst [vmem:[#allocation10] sm:$0xff] %v486_v13 }
 0x2bc   :  { %730 = shalt.err (!%p727_p10)
}
 0x2bd   :  { %501 = dma.vmem_to_hbm [thread:$0]  %s499_s26, 128, %s836_s7, [#allocation4]  }
 0x2be   :  { %745 = dma.done.wait [#allocation4], 128  }
 0x2bf   :  { %746 = vsyncadd [#allocation4], 4294967168 }
 0x2c0   :  { %505 = vsyncpa [#allocation3], 1 }
 0x2c1   :  { %506 = vsyncpa [#allocation6], 1 }
 0x2c2   :  { %507 = vsyncpa [#allocation9], 1 }
 0x2c3   :  { %508 = vsyncpa [#allocation4], 1 }

</bundles_post_ra>
